<compile_context>
chip_gen: v7x
topology: tpu7x:2x2x1
jax: 0.10.0
libtpu: 0.0.40
codegen_flags: <defaults>
</compile_context>

<pallas_src>
import jax
import jax.numpy as jnp
from jax.experimental import pallas as pl
from jax.experimental.pallas import tpu as pltpu


def _round_up(n, m):
    return ((n + m - 1) // m) * m


def mlp_kernel(x_ref, w1_ref, b1_ref, w2_ref, b2_ref, w3_ref, b3_ref, o_ref):
    # x_ref : (in_f, tile)   -- batch on the 128-lane axis
    # wN_ref: (out_f, in_f)  torch-native layout ; bN_ref: (out_f, 1) lane-broadcast
    x = x_ref[...]
    w1 = w1_ref[...]

    # Layer 1 on the VPU: K = in_features (=2) would use <2% of an MXU pass
    # while still paying the full batch-streaming cadence, so compute it as a
    # rank-K broadcast update instead (the VALU has plenty of slack here).
    h1 = b1_ref[...]                          # (25, 1) lane-broadcast
    for k in range(x.shape[0]):               # static Python loop, in_f = 2
        h1 = h1 + w1[:, k:k + 1] * x[k:k + 1, :]
    h1 = jnp.maximum(h1, 0.0)

    h2 = jnp.dot(w2_ref[...], h1, preferred_element_type=jnp.float32) + b2_ref[...]
    h2 = jnp.maximum(h2, 0.0)

    out = jnp.dot(w3_ref[...], h2, preferred_element_type=jnp.float32) + b3_ref[...]
    o_ref[...] = out.astype(o_ref.dtype)


def _choose_tile(batch, tb_max):
    """Pick the actual batch tile.

    * Tiny batches (<= 256) run as one full-extent block (legal even when not
      128-aligned, because block dim == array dim).
    * Otherwise: 128-lane aligned, capped at tb_max, and clamped to ~ceil(B/2)
      so the grid always has >= 2 blocks for v7x's two TensorCores.  The last
      block may be ragged -- no batch padding needed.
    """
    if batch <= 256:
        return batch
    two_way = _round_up(-(-batch // 2), 128)
    return max(128, min(tb_max, two_way))


def mlp_forward_fb(x_fb, params, *, tb=32768):
    """Preferred entry point: x_fb is (in_features, B); returns (out_classes, B).

    No wrapper-side transposes / pads / slices -- the kernel streams x / out
    tiles straight from / to their HBM layout.
    """
    w1, b1, w2, b2, w3, b3 = params
    in_f, batch = x_fb.shape
    out_f = w3.shape[0]

    tile = _choose_tile(batch, tb)
    grid = (pl.cdiv(batch, tile),)

    # ~512*tile bytes of VMEM per grid step (x/out double buffers + padded f32
    # intermediates) plus headroom; capped below v7x's 64 MiB/TC physical VMEM.
    vmem_bytes = int(min(56 << 20, max(8 << 20, 512 * tile + (2 << 20))))

    # Weights/biases: full-array blocks with constant index_map -> DMA'd into
    # VMEM once and resident across every batch tile.
    resident = lambda a: pl.BlockSpec(a.shape, lambda i: (0, 0))

    return pl.pallas_call(
        mlp_kernel,
        out_shape=jax.ShapeDtypeStruct((out_f, batch), jnp.float32),
        grid=grid,
        in_specs=[
            pl.BlockSpec((in_f, tile), lambda i: (0, i)),   # stream x batch tiles
            resident(w1), resident(b1),
            resident(w2), resident(b2),
            resident(w3), resident(b3),
        ],
        out_specs=pl.BlockSpec((out_f, tile), lambda i: (0, i)),
        compiler_params=pltpu.CompilerParams(
            dimension_semantics=("parallel",),   # shard tiles over v7x's 2 TCs
            vmem_limit_bytes=vmem_bytes,
        ),
    )(x_fb, w1, b1, w2, b2, w3, b3)


def mlp_forward(x, params, *, tb=32768):
    """PyTorch-layout wrapper: x (B, in_features) -> (B, out_classes).

    Costs one transpose each way; performance-critical callers should use
    mlp_forward_fb with (features, batch) activations directly.
    """
    return mlp_forward_fb(x.T, params, tb=tb).T


def init_linear(key, fan_in, fan_out):
    # torch.nn.Linear default init: U(-1/sqrt(fan_in), 1/sqrt(fan_in)).
    # Weight kept in native (out_features, in_features) layout; bias as (out_f, 1).
    kw, kb = jax.random.split(key)
    bound = 1.0 / jnp.sqrt(jnp.float32(fan_in))
    w = jax.random.uniform(kw, (fan_out, fan_in), jnp.float32, -bound, bound)
    b = jax.random.uniform(kb, (fan_out, 1), jnp.float32, -bound, bound)
    return w, b


def mlp_reference(x, params):
    w1, b1, w2, b2, w3, b3 = params
    h = jnp.maximum(x @ w1.T + b1[:, 0], 0.0)
    h = jnp.maximum(h @ w2.T + b2[:, 0], 0.0)
    return h @ w3.T + b3[:, 0]


if __name__ == "__main__":
    in_features = 2      # xor.csv columns x1, x2
    out_classes = 2

    key = jax.random.PRNGKey(0)
    kx1, kx2, k1, k2, k3 = jax.random.split(key, 5)

    w1, b1 = init_linear(k1, in_features, 25)
    w2, b2 = init_linear(k2, 25, 15)
    w3, b3 = init_linear(k3, 15, out_classes)
    params = (w1, b1, w2, b2, w3, b3)

    fwd = jax.jit(mlp_forward)

    # Small batch: single full-extent block.
    x_small = jax.random.normal(kx1, (8, in_features), jnp.float32)
    out_small = jax.block_until_ready(fwd(x_small, params))
    assert out_small.shape == (8, out_classes)
    assert jnp.allclose(out_small, mlp_reference(x_small, params),
                        atol=1e-4, rtol=1e-4)

    # Non-aligned batch > 256: two grid tiles (256 + ragged 136) -- exercises
    # the ragged last block, resident weights and the "parallel" grid axis.
    x_big = jax.random.normal(kx2, (392, in_features), jnp.float32)
    out_big = jax.block_until_ready(fwd(x_big, params))
    assert out_big.shape == (392, out_classes)
    assert jnp.allclose(out_big, mlp_reference(x_big, params),
                        atol=1e-4, rtol=1e-4)

    print("KERNEL_OK")
</pallas_src>

<mosaic_0001>
module attributes {stable_mosaic.version = 11 : i64} {
  func.func @mlp_kernel(%arg0: i32, %arg1: memref<2x8xf32, #tpu.memory_space<vmem>>, %arg2: memref<25x2xf32, #tpu.memory_space<vmem>>, %arg3: memref<25x1xf32, #tpu.memory_space<vmem>>, %arg4: memref<15x25xf32, #tpu.memory_space<vmem>>, %arg5: memref<15x1xf32, #tpu.memory_space<vmem>>, %arg6: memref<2x15xf32, #tpu.memory_space<vmem>>, %arg7: memref<2x1xf32, #tpu.memory_space<vmem>>, %arg8: memref<2x8xf32, #tpu.memory_space<vmem>>) attributes {dimension_semantics = [#tpu.dimension_semantics<parallel>], iteration_bounds = array<i64: 1>, scalar_prefetch = 0 : i64, scratch_operands = 0 : i64, tpu.core_type = #tpu.core_type<tc>, window_params = [{transform_indices = @transform_0, window_bounds = array<i64: 2, 8>}, {pipeline_mode = #tpu.pipeline_mode<synchronous>, transform_indices = @transform_1, window_bounds = array<i64: 25, 2>}, {pipeline_mode = #tpu.pipeline_mode<synchronous>, transform_indices = @transform_2, window_bounds = array<i64: 25, 1>}, {pipeline_mode = #tpu.pipeline_mode<synchronous>, transform_indices = @transform_3, window_bounds = array<i64: 15, 25>}, {pipeline_mode = #tpu.pipeline_mode<synchronous>, transform_indices = @transform_4, window_bounds = array<i64: 15, 1>}, {pipeline_mode = #tpu.pipeline_mode<synchronous>, transform_indices = @transform_5, window_bounds = array<i64: 2, 15>}, {pipeline_mode = #tpu.pipeline_mode<synchronous>, transform_indices = @transform_6, window_bounds = array<i64: 2, 1>}, {transform_indices = @transform_7, window_bounds = array<i64: 2, 8>}]} {
    %c0 = arith.constant 0 : index
    %c0_0 = arith.constant 0 : index
    %0 = vector.load %arg1[%c0, %c0_0] : memref<2x8xf32, #tpu.memory_space<vmem>>, vector<2x8xf32>
    %c0_1 = arith.constant 0 : index
    %c0_2 = arith.constant 0 : index
    %1 = vector.load %arg2[%c0_1, %c0_2] : memref<25x2xf32, #tpu.memory_space<vmem>>, vector<25x2xf32>
    %c0_3 = arith.constant 0 : index
    %c0_4 = arith.constant 0 : index
    %2 = vector.load %arg3[%c0_3, %c0_4] : memref<25x1xf32, #tpu.memory_space<vmem>>, vector<25x1xf32>
    %3 = vector.extract_strided_slice %1 {offsets = [0, 0], sizes = [25, 1], strides = [1, 1]} : vector<25x2xf32> to vector<25x1xf32>
    %4 = vector.extract_strided_slice %0 {offsets = [0, 0], sizes = [1, 8], strides = [1, 1]} : vector<2x8xf32> to vector<1x8xf32>
    %5 = vector.broadcast %3 : vector<25x1xf32> to vector<25x8xf32>
    %6 = vector.broadcast %4 : vector<1x8xf32> to vector<25x8xf32>
    %7 = arith.mulf %5, %6 : vector<25x8xf32>
    %8 = vector.broadcast %2 : vector<25x1xf32> to vector<25x8xf32>
    %9 = arith.addf %8, %7 : vector<25x8xf32>
    %10 = vector.extract_strided_slice %1 {offsets = [0, 1], sizes = [25, 1], strides = [1, 1]} : vector<25x2xf32> to vector<25x1xf32>
    %11 = vector.extract_strided_slice %0 {offsets = [1, 0], sizes = [1, 8], strides = [1, 1]} : vector<2x8xf32> to vector<1x8xf32>
    %12 = vector.broadcast %10 : vector<25x1xf32> to vector<25x8xf32>
    %13 = vector.broadcast %11 : vector<1x8xf32> to vector<25x8xf32>
    %14 = arith.mulf %12, %13 : vector<25x8xf32>
    %15 = arith.addf %9, %14 : vector<25x8xf32>
    %cst = arith.constant 0.000000e+00 : f32
    %16 = vector.broadcast %cst : f32 to vector<25x8xf32>
    %17 = arith.maximumf %15, %16 : vector<25x8xf32>
    %c0_5 = arith.constant 0 : index
    %c0_6 = arith.constant 0 : index
    %18 = vector.load %arg4[%c0_5, %c0_6] : memref<15x25xf32, #tpu.memory_space<vmem>>, vector<15x25xf32>
    %cst_7 = arith.constant dense<0.000000e+00> : vector<15x8xf32>
    %19 = tpu.matmul %18, %17, %cst_7 {dimension_numbers = #tpu.dot_dimension_numbers<[1], [0], [0], [1], [0, 0, 1, 1], [], []>} : vector<15x25xf32>, vector<25x8xf32>, vector<15x8xf32> -> vector<15x8xf32>
    %c0_8 = arith.constant 0 : index
    %c0_9 = arith.constant 0 : index
    %20 = vector.load %arg5[%c0_8, %c0_9] : memref<15x1xf32, #tpu.memory_space<vmem>>, vector<15x1xf32>
    %21 = vector.broadcast %20 : vector<15x1xf32> to vector<15x8xf32>
    %22 = arith.addf %19, %21 : vector<15x8xf32>
    %cst_10 = arith.constant 0.000000e+00 : f32
    %23 = vector.broadcast %cst_10 : f32 to vector<15x8xf32>
    %24 = arith.maximumf %22, %23 : vector<15x8xf32>
    %c0_11 = arith.constant 0 : index
    %c0_12 = arith.constant 0 : index
    %25 = vector.load %arg6[%c0_11, %c0_12] : memref<2x15xf32, #tpu.memory_space<vmem>>, vector<2x15xf32>
    %cst_13 = arith.constant dense<0.000000e+00> : vector<2x8xf32>
    %26 = tpu.matmul %25, %24, %cst_13 {dimension_numbers = #tpu.dot_dimension_numbers<[1], [0], [0], [1], [0, 0, 1, 1], [], []>} : vector<2x15xf32>, vector<15x8xf32>, vector<2x8xf32> -> vector<2x8xf32>
    %c0_14 = arith.constant 0 : index
    %c0_15 = arith.constant 0 : index
    %27 = vector.load %arg7[%c0_14, %c0_15] : memref<2x1xf32, #tpu.memory_space<vmem>>, vector<2x1xf32>
    %28 = vector.broadcast %27 : vector<2x1xf32> to vector<2x8xf32>
    %29 = arith.addf %26, %28 : vector<2x8xf32>
    %c0_16 = arith.constant 0 : index
    %c0_17 = arith.constant 0 : index
    %30 = vector.load %arg8[%c0_16, %c0_17] : memref<2x8xf32, #tpu.memory_space<vmem>>, vector<2x8xf32>
    tpu.vector_store %arg8[%c0_16, %c0_17], %29 {strides = array<i32>} : memref<2x8xf32, #tpu.memory_space<vmem>>, vector<2x8xf32>,
    return
  }
  func.func @transform_0(%arg0: i32) -> (i32, i32) {
    %c0_i32 = arith.constant 0 : i32
    %c0_i32_0 = arith.constant 0 : i32
    return %c0_i32, %arg0 : i32, i32
  }
  func.func @transform_1(%arg0: i32) -> (i32, i32) {
    %c0_i32 = arith.constant 0 : i32
    %c0_i32_0 = arith.constant 0 : i32
    %c0_i32_1 = arith.constant 0 : i32
    return %c0_i32, %c0_i32_0 : i32, i32
  }
  func.func @transform_2(%arg0: i32) -> (i32, i32) {
    %c0_i32 = arith.constant 0 : i32
    %c0_i32_0 = arith.constant 0 : i32
    %c0_i32_1 = arith.constant 0 : i32
    return %c0_i32, %c0_i32_0 : i32, i32
  }
  func.func @transform_3(%arg0: i32) -> (i32, i32) {
    %c0_i32 = arith.constant 0 : i32
    %c0_i32_0 = arith.constant 0 : i32
    %c0_i32_1 = arith.constant 0 : i32
    return %c0_i32, %c0_i32_0 : i32, i32
  }
  func.func @transform_4(%arg0: i32) -> (i32, i32) {
    %c0_i32 = arith.constant 0 : i32
    %c0_i32_0 = arith.constant 0 : i32
    %c0_i32_1 = arith.constant 0 : i32
    return %c0_i32, %c0_i32_0 : i32, i32
  }
  func.func @transform_5(%arg0: i32) -> (i32, i32) {
    %c0_i32 = arith.constant 0 : i32
    %c0_i32_0 = arith.constant 0 : i32
    %c0_i32_1 = arith.constant 0 : i32
    return %c0_i32, %c0_i32_0 : i32, i32
  }
  func.func @transform_6(%arg0: i32) -> (i32, i32) {
    %c0_i32 = arith.constant 0 : i32
    %c0_i32_0 = arith.constant 0 : i32
    %c0_i32_1 = arith.constant 0 : i32
    return %c0_i32, %c0_i32_0 : i32, i32
  }
  func.func @transform_7(%arg0: i32) -> (i32, i32) {
    %c0_i32 = arith.constant 0 : i32
    %c0_i32_0 = arith.constant 0 : i32
    return %c0_i32, %arg0 : i32, i32
  }
}

</mosaic_0001>

<bundles_post_ra>
// kernel: mlp_forward.1
= control target key start
LH: loop header
LB: loop body
LE: loop exit
PB: predicated region body
PF: predicated region fallthrough
CT: control target
= control target key end

     0   :  { %v408_v2 = vmov 0   ;;  %s516_s0 = inlined_call_operand.vmem [shape: f32[2,8], index: 0, kind: input, shape index: {}]   ;;  %s517_s1 = inlined_call_operand.vmem [shape: f32[25,2], index: 1, kind: input, shape index: {}]   ;;  %s518_s2 = inlined_call_operand.vmem [shape: f32[25,1], index: 2, kind: input, shape index: {}]   ;;  %s519_s3 = inlined_call_operand.vmem [shape: f32[15,25], index: 3, kind: input, shape index: {}]   ;;  %s520_s4 = inlined_call_operand.vmem [shape: f32[15,1], index: 4, kind: input, shape index: {}]   ;;  %s521_s5 = inlined_call_operand.vmem [shape: f32[2,15], index: 5, kind: input, shape index: {}]   ;;  %s522_s6 = inlined_call_operand.vmem [shape: f32[2,1], index: 6, kind: input, shape index: {}]   ;;  %s523_s7 = inlined_call_operand.hbm [shape: f32[2,8], index: 7, kind: output, shape index: {}]  }
   0x1   :  { %v32_v0 = vld [vmem:[%s518_s2] sm:$0xff]  ;;  %377 = vset.pattern.permute.xlu1 %v408_v2  ;;  %376 = vset.pattern.permute.xlu0 %v408_v2  ;;  %v33_v3 = vld [vmem:[%s518_s2 + $0x8] sm:$0xff] }
   0x2   :  { %v28_v1 = vld [vmem:[%s517_s1] sm:$0xff]  ;;  %66 = vperm.xlu1 %377, %v32_v0   ;;  %v29_v4 = vld [vmem:[%s517_s1 + $0x8] sm:$0xff] }
   0x3   :  { %38 = vperm.xlu0 %376, %v28_v1  }
   0x4   :  { %12 = vsyncpa [#allocation3], 0  ;;  %v31_v5 = vld [vmem:[%s517_s1 + $0x18] sm:$0x1]  ;;  %v409_v6 = vmov 1   ;;  %v30_v7 = vld [vmem:[%s517_s1 + $0x10] sm:$0xff]  ;;  %v56_v14 = vlaneseq }
   0x5   :  { %v34_v8 = vld [vmem:[%s518_s2 + $0x10] sm:$0xff]  ;;  %v35_v9 = vld [vmem:[%s518_s2 + $0x18] sm:$0x1]  ;;  %v120_v10 = vld [vmem:[%s519_s3] sm:$0xff]  ;;  %vm134_vm0 = vcmask 203776   ;;  %vm141_vm1 = vcmask 1040384  }
   0x6   :  { %71 = vperm.xlu1 %377, %v33_v3   ;;  %345 = vmatprep.mubr.msk.f32.mxu0 %vm134_vm0, %v120_v10  ;;  %v122_v11 = vld [vmem:[%s520_s4] sm:$0xff]  ;;  %v123_v12 = vld [vmem:[%s520_s4 + $0x8] sm:$0x7f]  ;;  %v57_v15 = vshrl.u32 %v56_v14, 7  ;;  %vm410_vm2 = vmmov 1   ;;  %v411_v56 = vmov 0.0|0.0  }
   0x7   :  { %43 = vperm.xlu0 %376, %v29_v4   ;;  %v223_v13 = vld [vmem:[%s522_s6] sm:$0x3]  ;;  %vm360_vm3 = vmpackc.low %vm141_vm1, %vm410_vm2  ;;  %v121_v55 = vld [vmem:[%s519_s3 + $0x8] sm:$0x7f]  ;;  %365 = vmatprep.subr.bf16.mxu1 %v411_v56  ;;  %vm412_vm4 = vmmov 0   ;;  %v413_v57 = vmov 0.0  }
   0x8   :  { %v58_v18 = vsub.s32 0, %v57_v15  ;;  %v106_v19 = vsub.s32 1, %v57_v15  ;;  %v27_v20 = vld [vmem:[%s516_s0] sm:$0x3]  ;;  %352 = vmatprep.mubr.msk.f32.mxu1 %vm412_vm4, %v413_v57  ;;  %vm233_vm5 = vcmask 1046528   ;;  %vm229_vm7 = vcmask 121856  }
   0x9   :  { %vm367_vm6 = vmpackc.low %vm233_vm5, %vm410_vm2  ;;  %v222_v3 = vld [vmem:[%s521_s5] sm:$0x3]  ;;  %s414_s25 = smov [#allocation2]   ;;  %vm307_vm8 = vcmask 58368  }
   0xa   :  { %378 = vset.pattern.permute.xlu1 %v409_v6  ;;  %v59_v23 = vrot.slane %v27_v20, %v58_v18  ;;  %v107_v24 = vrot.slane %v27_v20, %v106_v19  ;;  %s315_s26 = sshll.u32 %s414_s25, 4  ;;  %s316_s26 = int_to_ptr.vmem [resolvable:$true] %s315_s26 }
   0xb   :  { %53 = vperm.xlu0 %376, %v31_v5   ;;  %93 = vperm.xlu1 %378, %v29_v4   ;;  %s384_s27 = scalar_lea.vmem %s316_s26, 32  ;;  %p389_p1 = scmp.lt.s32.totalorder %s316_s26, %s316_s26 }
   0xc   :  { %p385_p0 = scmp.ne.s32.totalorder %s316_s26, %s384_s27  ;;  %p390_p2 = scmp.lt.s32.totalorder %s384_s27, %s384_s27 }
   0xe   :  { %p391_p3 = por %p390_p2, %p389_p1 }
   0xf   :  { %380 = vset.pattern.permute.xlu0 %v409_v6  ;;  %379 = vset.pattern.permute.xlu1 %v408_v2 }
  0x10   :  { %89 = vperm.xlu0 %380, %v28_v1   ;;  %48 = vperm.xlu1 %379, %v30_v7   ;;  %p392_p4 = pnand %p391_p3, %p385_p0 }
  0x14   :  { %97 = vperm.xlu0 %380, %v30_v7   ;;  %76 = vperm.xlu1 %379, %v34_v8  }
  0x18   :  { %383 = vset.pattern.permute.xlu0 %v408_v2  ;;  %81 = vperm.xlu1 %379, %v35_v9  }
  0x19   :  { %131 = vperm.xlu0 %383, %v123_v12  }
  0x1c   :  { %381 = vset.pattern.permute.xlu1 %v409_v6 }
  0x1d   :  { %101 = vperm.xlu1 %381, %v31_v5  }
  0x21   :  { %382 = vset.pattern.permute.xlu1 %v408_v2 }
  0x22   :  { %126 = vperm.xlu1 %382, %v122_v11  }
  0x26   :  { %226 = vperm.xlu1 %382, %v223_v13  }
  0x81   :  { %v67_v16 = vpop.permute.xlu1 %66 }
  0x82   :  { %v39_v17 = vpop.permute.xlu0 %38 }
  0x83   :  { %v60_v28 = vmul.f32 %v59_v23, %v39_v17 }
  0x85   :  { %v72_v21 = vpop.permute.xlu1 %71  ;;  %v84_v32 = vadd.f32 %v67_v16, %v60_v28 }
  0x86   :  { %v44_v22 = vpop.permute.xlu0 %43 }
  0x87   :  { %v61_v25 = vmul.f32 %v59_v23, %v44_v22 }
  0x89   :  { %v85_v30 = vadd.f32 %v72_v21, %v61_v25 }
  0x8a   :  { %v54_v26 = vpop.permute.xlu0 %53  ;;  %v94_v27 = vpop.permute.xlu1 %93 }
  0x8b   :  { %v109_v29 = vmul.f32 %v107_v24, %v94_v27  ;;  %v63_v46 = vmul.f32 %v59_v23, %v54_v26 }
  0x8d   :  { %v113_v33 = vadd.f32 %v109_v29, %v85_v30 }
  0x8f   :  { %v90_v31 = vpop.permute.xlu0 %89  ;;  %v49_v35 = vpop.permute.xlu1 %48  ;;  %v117_v37 = vmax.f32 %v113_v33, 0.0 }
  0x90   :  { %v108_v34 = vmul.f32 %v107_v24, %v90_v31  ;;  %v62_v42 = vmul.f32 %v59_v23, %v49_v35 }
  0x92   :  { %v112_v36 = vadd.f32 %v108_v34, %v84_v32 }
  0x93   :  { %v77_v39 = vpop.permute.xlu1 %76  ;;  %v98_v41 = vpop.permute.xlu0 %97 }
  0x94   :  { %v116_v38 = vmax.f32 %v112_v36, 0.0  ;;  %v86_v44 = vadd.f32 %v77_v39, %v62_v42  ;;  %v110_v45 = vmul.f32 %v107_v24, %v98_v41 }
  0x96   :  { %v355_v40 = vpack.c.bf16 %v117_v37, %v116_v38  ;;  %v114_v48 = vadd.f32 %v110_v45, %v86_v44 }
  0x97   :  { %v82_v43 = vpop.permute.xlu1 %81 }
  0x98   :  { %356 = vmatprep.subr.bf16.mxu0 %v355_v40  ;;  %v87_v49 = vadd.f32 %v82_v43, %v63_v46  ;;  %v118_v52 = vmax.f32 %v114_v48, 0.0  ;;  %v132_v58 = vpop.permute.xlu0 %131 }
  0x99   :  { %358 = vmatpush3.bf16.msra.mxu0 %v355_v40 }
  0x9c   :  { %v102_v47 = vpop.permute.xlu1 %101 }
  0x9d   :  { %v111_v50 = vmul.f32 %v107_v24, %v102_v47 }
  0x9f   :  { %v115_v51 = vadd.f32 %v111_v50, %v87_v49 }
  0xa1   :  { %v119_v53 = vmax.f32 %v115_v51, 0.0  ;;  %v127_v60 = vpop.permute.xlu1 %126 }
  0xa3   :  { %v359_v54 = vpack.c.bf16 %v119_v53, %v118_v52 }
  0xa5   :  { %361 = vmatprep.subr.msk.bf16.mxu0 %vm360_vm3, %v359_v54  ;;  %v227_v4 = vpop.permute.xlu1 %226 }
  0xa6   :  { %364 = vmatpush3.bf16.msk.msra.mxu0 %vm360_vm3, %v359_v54 }
  0xa9   :  { %346 = vmatmul.mubr.msk.f32.vlgmr.msra.gmra.mrb[0].mxu0 %vm134_vm0, %v121_v55 }
 0x17c   :  { %v347_v59 = vpop.f32.mrb[0].mxu0 }
 0x17d   :  { %v217_v61 = vadd.f32 %v347_v59, %v132_v58  ;;  %v211_v62 = vpop.f32.mrb[1].mxu0 }
 0x17e   :  { %v212_v63 = vadd.f32 %v211_v62, %v127_v60 }
 0x17f   :  { %v221_v0 = vmax.f32 %v217_v61, 0.0 }
 0x180   :  { %v220_v1 = vmax.f32 %v212_v63, 0.0 }
 0x182   :  { %v366_v2 = vpack.c.bf16 %v221_v0, %v220_v1 }
 0x184   :  { %368 = vmatpush3.bf16.msk.msra.mxu1 %vm367_vm6, %v366_v2 }
 0x187   :  { %353 = vmatmul.mubr.msk.f32.vlgmr.msra.gmra.mrb[0].mxu1 %vm229_vm7, %v222_v3 }
 0x25a   :  { %v303_v5 = vpop.f32.mrb[0].mxu1 }
 0x25b   :  { %v304_v6 = vadd.f32 %v303_v5, %v227_v4  ;;  %v354_v7 = vpop.f32.mrb[1].mxu1 }
 0x25d   :  { %308 = vst.msk [vmem:[#allocation2] sm:$0x3] %vm307_vm8, %v304_v6 }
 0x25e   :  { %395 = shalt.err (!%p392_p4)
}
 0x25f   :  { %s396_s29 = scalar_lea.hbm %s523_s7, 32 }
 0x260   :  { %p397_p5 = scmp.ne.s32.totalorder %s523_s7, %s396_s29  ;;  %p400_p6 = scmp.lt.u32.totalorder %s396_s29, %s523_s7 }
 0x262   :  { %p402_p7 = pnand %p400_p6, %p397_p5 }
 0x264   :  { %405 = shalt.err (!%p402_p7)
}
 0x265   :  { %318 = dma.vmem_to_hbm [thread:$0]  %s316_s26, 32, %s523_s7, [#allocation3]  }
 0x266   :  { %406 = dma.done.wait [#allocation3], 32  }
 0x267   :  { %407 = vsyncadd [#allocation3], 4294967264 }
 0x268   :  { %322 = vsyncpa [#allocation3], 1 }

</bundles_post_ra>
